<compile_context>
chip_gen: v7x
topology: tpu7x:2x2x1
jax: 0.10.0
libtpu: 0.0.40
codegen_flags: <defaults>
</compile_context>

<pallas_src>
import functools
import math

import jax
import jax.numpy as jnp
from jax import lax
from jax.experimental import pallas as pl
from jax.experimental.pallas import tpu as pltpu


def make_pe(max_len: int, d_model: int, dtype=jnp.float32):
    """Same construction as the PyTorch buffer (without the singleton batch dim)."""
    position = jnp.arange(max_len, dtype=jnp.float32)[:, None]              # [L, 1]
    div_term = jnp.exp(
        jnp.arange(0, d_model, 2, dtype=jnp.float32) * (-math.log(10000.0) / d_model)
    )                                                                        # [D/2]
    pe = jnp.zeros((max_len, d_model), dtype=jnp.float32)
    pe = pe.at[:, 0::2].set(jnp.sin(position * div_term))
    pe = pe.at[:, 1::2].set(jnp.cos(position * div_term))
    return pe.astype(dtype)


def _mix_u32(x, seed):
    """splitmix32-style integer mixer (xor / shift / imul only -> portable VPU ops)."""
    x = x ^ seed
    x = (x ^ (x >> jnp.uint32(16))) * jnp.uint32(0x7FEB352D)
    x = (x ^ (x >> jnp.uint32(15))) * jnp.uint32(0x846CA68B)
    x = x ^ (x >> jnp.uint32(16))
    return x


def _pe_add_dropout_kernel(seed_ref, x_ref, pe_ref, o_ref, *,
                           p: float, training: bool, seq_tile: int):
    # x_ref / pe_ref / o_ref: [seq_tile, B*D] VMEM tiles; seed_ref: [1] uint32 in SMEM.
    y = x_ref[...] + pe_ref[...]

    if training and p > 0.0:
        ts, w = y.shape
        # Global element counter -> hash -> uint32 bits. Pure integer ops (no pltpu.prng_*).
        row = lax.broadcasted_iota(jnp.int32, (ts, w), 0) + pl.program_id(0) * seq_tile
        col = lax.broadcasted_iota(jnp.int32, (ts, w), 1)
        gidx = (row * w + col).astype(jnp.uint32)
        bits = _mix_u32(gidx, seed_ref[0])

        # Integer-threshold inverted dropout: drop iff bits < round(p * 2^32).
        threshold = jnp.uint32(min(int(round(p * float(1 << 32))), (1 << 32) - 1))
        keep = bits >= threshold
        y = jnp.where(keep, y * (1.0 / (1.0 - p)), jnp.zeros_like(y))

    o_ref[...] = y.astype(o_ref.dtype)


def _choose_seq_tile(S: int, row_bytes: int, max_tile_bytes: int = 2 << 20) -> int:
    """Biggest multiple-of-8 row count with tile <= max_tile_bytes (or the full S)."""
    rows = max(8, max_tile_bytes // max(row_bytes, 1))
    if rows >= S:
        return S                      # block == full dim: always a legal block shape
    return max(8, (rows // 8) * 8)    # multiple of 8 keeps the (8,128) rule happy


def positional_encoding_forward(x, pe, seed, *, p=0.1, training=False):
    """x: [S, B, D]; pe: [max_len, D] with max_len >= S; seed: int."""
    S, B, D = x.shape
    W = B * D

    # Lane-dense 2-D view; pe is broadcast over batch once, wrapper-side, in x.dtype.
    x2 = x.reshape(S, W)
    pe2 = jnp.broadcast_to(pe[:S].astype(x.dtype)[:, None, :], (S, B, D)).reshape(S, W)

    seq_tile = _choose_seq_tile(S, W * x.dtype.itemsize)
    grid = (pl.cdiv(S, seq_tile),)

    seed_arr = jnp.asarray([seed], dtype=jnp.uint32)
    kernel = functools.partial(
        _pe_add_dropout_kernel, p=float(p), training=bool(training), seq_tile=seq_tile
    )

    y2 = pl.pallas_call(
        kernel,
        out_shape=jax.ShapeDtypeStruct((S, W), x.dtype),
        grid=grid,
        in_specs=[
            pl.BlockSpec(memory_space=pltpu.MemorySpace.SMEM),       # seed scalar
            pl.BlockSpec((seq_tile, W), lambda i: (i, 0)),           # x tile
            pl.BlockSpec((seq_tile, W), lambda i: (i, 0)),           # pe tile
        ],
        out_specs=pl.BlockSpec((seq_tile, W), lambda i: (i, 0)),
        compiler_params=pltpu.CompilerParams(
            dimension_semantics=("parallel",),     # independent tiles -> megacore on v7x
            vmem_limit_bytes=64 << 20,             # headroom; tiles sized to fit v7x's 64 MiB
        ),
    )(seed_arr, x2, pe2)

    return y2.reshape(S, B, D)


if __name__ == "__main__":
    # Small shapes consistent with the module's forward: x is [seq, batch, d_model].
    SEQ, BATCH, D_MODEL = 16, 2, 32
    MAX_LEN = 64
    DROPOUT_P = 0.1

    key = jax.random.PRNGKey(0)
    x = jax.random.normal(key, (SEQ, BATCH, D_MODEL), dtype=jnp.float32)
    pe = make_pe(MAX_LEN, D_MODEL)

    # Eval mode (dropout is identity) — must match the pure-JAX reference.
    y_eval = positional_encoding_forward(x, pe, seed=0, p=DROPOUT_P, training=False)
    y_eval = jax.block_until_ready(y_eval)
    y_ref = x + pe[:SEQ][:, None, :]
    assert jnp.allclose(y_eval, y_ref, atol=1e-6), "eval-mode mismatch vs reference"

    # Training mode (inverted dropout) — kept elements must equal (x+pe)/(1-p),
    # and the dropped fraction should be plausible for p=0.1.
    y_train = positional_encoding_forward(x, pe, seed=1234, p=DROPOUT_P, training=True)
    y_train = jax.block_until_ready(y_train)
    kept = y_train != 0.0
    assert jnp.allclose(
        jnp.where(kept, y_train, 0.0),
        jnp.where(kept, y_ref / (1.0 - DROPOUT_P), 0.0),
        atol=1e-5,
    ), "kept dropout values are not scaled (x+pe)/(1-p)"
    drop_frac = float(jnp.mean(~kept))
    assert 0.0 < drop_frac < 0.5, f"dropout fraction looks wrong: {drop_frac}"

    print("KERNEL_OK")
</pallas_src>

<mosaic_0001>
module attributes {stable_mosaic.version = 11 : i64} {
  func.func @_pe_add_dropout_kernel(%arg0: i32, %arg1: memref<1xi32, #tpu.memory_space<smem>>, %arg2: memref<16x64xf32, #tpu.memory_space<vmem>>, %arg3: memref<16x64xf32, #tpu.memory_space<vmem>>, %arg4: memref<16x64xf32, #tpu.memory_space<vmem>>) attributes {dimension_semantics = [#tpu.dimension_semantics<parallel>], iteration_bounds = array<i64: 1>, scalar_prefetch = 0 : i64, scratch_operands = 0 : i64, tpu.core_type = #tpu.core_type<tc>, window_params = [{transform_indices = @transform_0, window_bounds = array<i64: 1>}, {transform_indices = @transform_1, window_bounds = array<i64: 16, 64>}, {transform_indices = @transform_2, window_bounds = array<i64: 16, 64>}, {transform_indices = @transform_3, window_bounds = array<i64: 16, 64>}]} {
    %c0 = arith.constant 0 : index
    %c0_0 = arith.constant 0 : index
    %0 = vector.load %arg2[%c0, %c0_0] : memref<16x64xf32, #tpu.memory_space<vmem>>, vector<16x64xf32>
    %c0_1 = arith.constant 0 : index
    %c0_2 = arith.constant 0 : index
    %1 = vector.load %arg3[%c0_1, %c0_2] : memref<16x64xf32, #tpu.memory_space<vmem>>, vector<16x64xf32>
    %2 = arith.addf %0, %1 : vector<16x64xf32>
    %c0_3 = arith.constant 0 : index
    %c0_4 = arith.constant 0 : index
    %3 = vector.load %arg4[%c0_3, %c0_4] : memref<16x64xf32, #tpu.memory_space<vmem>>, vector<16x64xf32>
    tpu.vector_store %arg4[%c0_3, %c0_4], %2 {strides = array<i32>} : memref<16x64xf32, #tpu.memory_space<vmem>>, vector<16x64xf32>,
    return
  }
  func.func @transform_0(%arg0: i32) -> i32 {
    %c0_i32 = arith.constant 0 : i32
    %c0_i32_0 = arith.constant 0 : i32
    return %c0_i32 : i32
  }
  func.func @transform_1(%arg0: i32) -> (i32, i32) {
    %c0_i32 = arith.constant 0 : i32
    %c0_i32_0 = arith.constant 0 : i32
    return %arg0, %c0_i32 : i32, i32
  }
  func.func @transform_2(%arg0: i32) -> (i32, i32) {
    %c0_i32 = arith.constant 0 : i32
    %c0_i32_0 = arith.constant 0 : i32
    return %arg0, %c0_i32 : i32, i32
  }
  func.func @transform_3(%arg0: i32) -> (i32, i32) {
    %c0_i32 = arith.constant 0 : i32
    %c0_i32_0 = arith.constant 0 : i32
    return %arg0, %c0_i32 : i32, i32
  }
}

</mosaic_0001>

<bundles_post_ra>
// kernel: tpu_custom_call.1
= control target key start
LH: loop header
LB: loop body
LE: loop exit
PB: predicated region body
PF: predicated region fallthrough
CT: control target
= control target key end

     0   :  { %9 = vsyncpa [#allocation4], 0  ;;  %s218_s0 = inlined_call_operand.<no memory space> [shape: u32[1], index: 0, kind: input, shape index: {}]   ;;  %s219_s1 = inlined_call_operand.hbm [shape: f32[16,64], index: 1, kind: input, shape index: {}]   ;;  %s220_s2 = inlined_call_operand.hbm [shape: f32[16,64], index: 2, kind: input, shape index: {}]   ;;  %s221_s3 = inlined_call_operand.hbm [shape: f32[16,64], index: 3, kind: output, shape index: {}]  }
   0x1   :  { %10 = vsyncpa [#allocation7], 0 }
   0x2   :  { %11 = vsyncpa [#allocation5], 0  ;;  %s148_s12 = smov [#allocation3]   ;;  %s76_s16 = scalar_lea.hbm %s219_s1, 256 }
   0x3   :  { %s19_s13 = sshll.u32 %s148_s12, 4  ;;  %p77_p0 = scmp.ne.s32.totalorder %s219_s1, %s76_s16  ;;  %s20_s13 = int_to_ptr.vmem [resolvable:$true] %s19_s13 }
   0x4   :  { %p80_p1 = scmp.lt.u32.totalorder %s76_s16, %s219_s1 }
   0x6   :  { %p82_p2 = pnand %p80_p1, %p77_p0 }
   0x8   :  { %85 = shalt.err (!%p82_p2)
}
   0x9   :  { %s86_s20 = scalar_lea.vmem %s20_s13, 256  ;;  %p91_p4 = scmp.lt.s32.totalorder %s20_s13, %s20_s13 }
   0xa   :  { %p87_p3 = scmp.ne.s32.totalorder %s20_s13, %s86_s20  ;;  %p92_p5 = scmp.lt.s32.totalorder %s86_s20, %s86_s20 }
   0xc   :  { %p93_p6 = por %p92_p5, %p91_p4 }
   0xe   :  { %p94_p7 = pnand %p93_p6, %p87_p3 }
  0x10   :  { %97 = shalt.err (!%p94_p7)
}
  0x11   :  { %s149_s21 = smov 128   ;;  %s150_s22 = smov 8  }
  0x12   :  { %25 = dma.hbm_to_vmem [thread:$0]  %s219_s1, 256, %s20_s13, [#allocation4], %s149_s21, %s149_s21, %s150_s22  }
  0x13   :  { %s151_s25 = smov [#allocation6]   ;;  %s98_s29 = scalar_lea.hbm %s220_s2, 256 }
  0x14   :  { %s31_s26 = sshll.u32 %s151_s25, 4  ;;  %p99_p8 = scmp.ne.s32.totalorder %s220_s2, %s98_s29  ;;  %s32_s26 = int_to_ptr.vmem [resolvable:$true] %s31_s26 }
  0x15   :  { %p102_p9 = scmp.lt.u32.totalorder %s98_s29, %s220_s2 }
  0x17   :  { %p104_p10 = pnand %p102_p9, %p99_p8 }
  0x19   :  { %107 = shalt.err (!%p104_p10)
}
  0x1a   :  { %s108_s7 = scalar_lea.vmem %s32_s26, 256  ;;  %p113_p12 = scmp.lt.s32.totalorder %s32_s26, %s32_s26 }
  0x1b   :  { %p109_p11 = scmp.ne.s32.totalorder %s32_s26, %s108_s7  ;;  %p114_p13 = scmp.lt.s32.totalorder %s108_s7, %s108_s7 }
  0x1d   :  { %p115_p0 = por %p114_p13, %p113_p12 }
  0x1f   :  { %p116_p1 = pnand %p115_p0, %p109_p11 }
  0x21   :  { %119 = shalt.err (!%p116_p1)
}
  0x22   :  { %37 = dma.hbm_to_vmem [thread:$0]  %s220_s2, 256, %s32_s26, [#allocation7], %s149_s21, %s149_s21, %s150_s22  }
  0x23   :  { %142 = dma.done.wait [#allocation4], 256  }
  0x24   :  { %143 = vsyncadd [#allocation4], 4294967040 }
  0x25   :  { %144 = dma.done.wait [#allocation7], 256  }
  0x26   :  { %145 = vsyncadd [#allocation7], 4294967040  ;;  %s152_s9 = smov [#allocation8]   ;;  %v44_v0 = vld [vmem:[#allocation3] sm:$0xff]  ;;  %v46_v1 = vld [vmem:[#allocation6] sm:$0xff]  ;;  %vm50_vm0 = vcmask 523264  }
  0x27   :  { %s58_s10 = sshll.u32 %s152_s9, 4  ;;  %v45_v2 = vld [vmem:[#allocation3 + $0x8] sm:$0xff]  ;;  %v48_v3 = vadd.f32 %v46_v1, %v44_v0  ;;  %v47_v4 = vld [vmem:[#allocation6 + $0x8] sm:$0xff]  ;;  %s59_s10 = int_to_ptr.vmem [resolvable:$true] %s58_s10 }
  0x28   :  { %v49_v5 = vadd.f32 %v47_v4, %v45_v2  ;;  %s120_s11 = scalar_lea.vmem %s59_s10, 256  ;;  %p125_p3 = scmp.lt.s32.totalorder %s59_s10, %s59_s10 }
  0x29   :  { %51 = vst.msk [vmem:[#allocation8] sm:$0xff] %vm50_vm0, %v48_v3  ;;  %p121_p2 = scmp.ne.s32.totalorder %s59_s10, %s120_s11  ;;  %p126_p4 = scmp.lt.s32.totalorder %s120_s11, %s120_s11 }
  0x2a   :  { %52 = vst.msk [vmem:[#allocation8 + $0x8] sm:$0xff] %vm50_vm0, %v49_v5 }
  0x2b   :  { %p127_p5 = por %p126_p4, %p125_p3 }
  0x2d   :  { %p128_p6 = pnand %p127_p5, %p121_p2 }
  0x2f   :  { %131 = shalt.err (!%p128_p6)
}
  0x30   :  { %s132_s13 = scalar_lea.hbm %s221_s3, 256 }
  0x31   :  { %p133_p7 = scmp.ne.s32.totalorder %s221_s3, %s132_s13  ;;  %p136_p8 = scmp.lt.u32.totalorder %s132_s13, %s221_s3 }
  0x33   :  { %p138_p9 = pnand %p136_p8, %p133_p7 }
  0x35   :  { %141 = shalt.err (!%p138_p9)
}
  0x36   :  { %64 = dma.vmem_to_hbm [thread:$0]  %s59_s10, 256, %s221_s3, [#allocation5], %s149_s21, %s149_s21, %s150_s22  }
  0x37   :  { %146 = dma.done.wait [#allocation5], 256  }
  0x38   :  { %147 = vsyncadd [#allocation5], 4294967040 }
  0x39   :  { %68 = vsyncpa [#allocation4], 1 }
  0x3a   :  { %69 = vsyncpa [#allocation7], 1 }
  0x3b   :  { %70 = vsyncpa [#allocation5], 1 }

</bundles_post_ra>
